<compile_context>
chip_gen: v7x
topology: tpu7x:2x2x1
jax: 0.10.0
libtpu: 0.0.40
codegen_flags: <defaults>
</compile_context>

<pallas_src>
import jax
import jax.numpy as jnp
from jax.experimental import pallas as pl
from jax.experimental.pallas import tpu as pltpu


# ----------------------------------------------------------------------------
# Pallas kernel: fused bf16 matmul(s) (f32 acc) + folded-BN bias + Mish
# (+ optional residual)
# ----------------------------------------------------------------------------
def _mish(y):
    # mish(x) = x * tanh(softplus(x)) = x * ((1+e^x)^2 - 1) / ((1+e^x)^2 + 1)
    # -> single exp + approx reciprocal instead of exp/log1p/tanh (EUP relief).
    y_c = jnp.minimum(y, 20.0)                       # overflow guard for exp
    t = 1.0 + jnp.exp(y_c)
    u = t * t
    r = (u - 1.0) * pl.reciprocal(u + 1.0, approx=True)
    return jnp.where(y > 20.0, y, y * r)             # mish(x) ~= x for x > 20


def _make_kernel(n_x, has_res):
    """Kernel over refs: x_0..x_{n-1}, w_0..w_{n-1}, bias, [residual], out."""
    def kernel(*refs):
        o_ref = refs[-1]
        x_refs = refs[:n_x]
        w_refs = refs[n_x:2 * n_x]
        b_ref = refs[2 * n_x]
        acc = jnp.dot(x_refs[0][...], w_refs[0][...],
                      preferred_element_type=jnp.float32)
        for xr, wr in zip(x_refs[1:], w_refs[1:]):
            acc = acc + jnp.dot(xr[...], wr[...],
                                preferred_element_type=jnp.float32)
        y = _mish(acc + b_ref[...])
        if has_res:
            y = y + refs[2 * n_x + 1][...].astype(jnp.float32)
        o_ref[...] = y.astype(o_ref.dtype)
    return kernel


def _round_up(v, m):
    return (v + m - 1) // m * m


def fused_matmul_bn_mish(x_parts, w_parts, bias, residual=None):
    """y = mish(sum_i x_i @ w_i + bias) [+ residual], tiled over (M, Cout).

    x_parts[i]: (M, K_i) bf16/f32, w_parts[i]: (K_i, N).  Output bf16 (M, N).
    """
    M = x_parts[0].shape[0]
    N = w_parts[0].shape[1]
    for x, w in zip(x_parts, w_parts):
        assert x.shape == (M, w.shape[0]) and w.shape[1] == N, (x.shape, w.shape)

    # Lane-dense output: pad Cout to a multiple of 128 (unmasked vst).
    n_pad = _round_up(N, 128)
    # Sublane-aligned rows; tile M so VMEM stays bounded for any image size.
    m_pad = _round_up(M, 8)
    if m_pad <= 64:
        # Tiny deep-stage matmul: collapse grid to one step (all fits in VMEM;
        # avoids paying ~0.35us/step pipeline overhead several times over).
        tile_m, tile_n = m_pad, n_pad
    else:
        tile_m = min(256, m_pad)          # fits v5e/v6e/v7x VMEM budgets
        m_pad = _round_up(m_pad, tile_m)
        tile_n = min(256, n_pad)
    assert m_pad % tile_m == 0 and n_pad % tile_n == 0

    # bf16 operands for the MXU; accumulation stays f32 in the kernel.
    xs, ws = [], []
    for x, w in zip(x_parts, w_parts):
        x = x.astype(jnp.bfloat16)
        w = w.astype(jnp.bfloat16)
        if m_pad != M:
            x = jnp.pad(x, ((0, m_pad - M), (0, 0)))
        if n_pad != N:
            w = jnp.pad(w, ((0, 0), (0, n_pad - N)))
        xs.append(x)
        ws.append(w)
    b = bias.reshape(1, N).astype(jnp.float32)
    if n_pad != N:
        b = jnp.pad(b, ((0, 0), (0, n_pad - N)))

    # X tiles stay resident across the inner Cout axis; W streams over it.
    in_specs = (
        [pl.BlockSpec((tile_m, x.shape[1]), lambda i, j: (i, 0)) for x in xs]
        + [pl.BlockSpec((w.shape[0], tile_n), lambda i, j: (0, j)) for w in ws]
        + [pl.BlockSpec((1, tile_n), lambda i, j: (0, j))]
    )
    args = xs + ws + [b]

    if residual is not None:
        r = residual.astype(jnp.bfloat16)
        r = jnp.pad(r, ((0, m_pad - M), (0, n_pad - N)))
        in_specs.append(pl.BlockSpec((tile_m, tile_n), lambda i, j: (i, j)))
        args.append(r)

    out = pl.pallas_call(
        _make_kernel(len(xs), residual is not None),
        out_shape=jax.ShapeDtypeStruct((m_pad, n_pad), jnp.bfloat16),
        grid=(m_pad // tile_m, n_pad // tile_n),
        in_specs=in_specs,
        out_specs=pl.BlockSpec((tile_m, tile_n), lambda i, j: (i, j)),
        compiler_params=pltpu.CompilerParams(
            dimension_semantics=("parallel", "parallel"),
            vmem_limit_bytes=48 * 1024 * 1024),   # safe on v5e/v6e/v7x
    )(*args)
    return out[:M, :N]


# ----------------------------------------------------------------------------
# Glue: im2col patch extraction (NHWC, bf16), parameter init, block application
# ----------------------------------------------------------------------------
def _im2col(x_nhwc, k, stride, pad):
    N, H, W, C = x_nhwc.shape
    if k == 1 and stride == 1 and pad == 0:
        return x_nhwc.reshape(N * H * W, C), (N, H, W)     # no-op reshape
    if pad:
        x_nhwc = jnp.pad(x_nhwc, ((0, 0), (pad, pad), (pad, pad), (0, 0)))
    Hout = (H + 2 * pad - k) // stride + 1
    Wout = (W + 2 * pad - k) // stride + 1
    cols = []
    for kh in range(k):
        for kw in range(k):
            cols.append(
                x_nhwc[:, kh:kh + Hout * stride:stride,
                       kw:kw + Wout * stride:stride, :])
    patches = jnp.concatenate(cols, axis=-1)            # (N, Hout, Wout, k*k*C)
    return patches.reshape(N * Hout * Wout, k * k * C), (N, Hout, Wout)


def init_conv_block(key, cin, cout, k, stride=1):
    # Conv2d: kaiming normal, fan_out, relu  ->  std = sqrt(2 / (cout*k*k))
    fan_out = cout * k * k
    w = jax.random.normal(key, (k, k, cin, cout), jnp.float32) * jnp.sqrt(
        2.0 / fan_out)
    # BatchNorm2d (eval): gamma=1, beta=0, running_mean=0, running_var=1.
    # Fold the BN scale directly into the conv weights (bias stays 0 here).
    eps = 1e-5
    w = w * (1.0 / jnp.sqrt(1.0 + eps))
    bias = jnp.zeros((cout,), jnp.float32)
    return dict(kind="conv", w=w, bias=bias, k=k, stride=stride)


def conv_block_apply(p, x_nhwc, residual=None):
    k, stride = p["k"], p["stride"]
    w = p["w"]                                    # (k, k, Cin, Cout), BN folded
    cout = w.shape[-1]
    # Activations are bf16 already; im2col stays bf16 (half the patch traffic).
    # TODO(synk): 3x3 convs still materialize im2col in HBM; in-kernel 9-tap
    # patch accumulation would remove the remaining activation-read inflation.
    x_mat, (N, Hout, Wout) = _im2col(
        x_nhwc.astype(jnp.bfloat16), k, stride, k // 2)
    w_mat = w.reshape(k * k * w.shape[2], cout)
    res_mat = None
    if residual is not None:
        res_mat = residual.reshape(N * Hout * Wout, cout)
    y = fused_matmul_bn_mish([x_mat], [w_mat], p["bias"], res_mat)
    return y.reshape(N, Hout, Wout, cout)


def init_csp_block(key, ch, num_blocks):
    half = ch // 2
    keys = jax.random.split(key, 4 + 2 * num_blocks)
    blocks = []
    for i in range(num_blocks):
        b1 = init_conv_block(keys[2 + 2 * i], half, half, 1)
        b2 = init_conv_block(keys[3 + 2 * i], half, half, 3)
        blocks.append((b1, b2))
    return dict(
        kind="csp",
        route1=init_conv_block(keys[0], ch, half, 1),
        route2=init_conv_block(keys[1], ch, half, 1),
        blocks=blocks,
        post=init_conv_block(keys[2 + 2 * num_blocks], half, half, 1),
        transition=init_conv_block(keys[3 + 2 * num_blocks], ch, ch, 1),
    )


def csp_block_apply(p, x_nhwc):
    N, H, W, C = x_nhwc.shape
    half = p["route1"]["w"].shape[-1]
    x_mat = x_nhwc.astype(jnp.bfloat16).reshape(N * H * W, C)

    # route2 | route1 share input, kernel size and activation -> one matmul
    # with concatenated Cout (halves route-conv activation reads).
    w_routes = jnp.concatenate(
        [p["route2"]["w"].reshape(C, half), p["route1"]["w"].reshape(C, half)],
        axis=-1)
    b_routes = jnp.concatenate([p["route2"]["bias"], p["route1"]["bias"]])
    routes = fused_matmul_bn_mish([x_mat], [w_routes], b_routes)
    y = routes[:, :half].reshape(N, H, W, half)   # route2 path (blocks)
    r1_mat = routes[:, half:]                     # route1 skip path

    for (b1, b2) in p["blocks"]:
        h = conv_block_apply(b1, y)
        y = conv_block_apply(b2, h, residual=y)   # residual add fused in kernel

    y = conv_block_apply(p["post"], y)

    # Transition 1x1 conv over concat([y, r1]) along channels without
    # materializing the concat: split W along Cin, sum two matmuls in-kernel.
    wt = p["transition"]["w"].reshape(C, C)
    y_mat = y.reshape(N * H * W, half)
    out = fused_matmul_bn_mish([y_mat, r1_mat], [wt[:half], wt[half:]],
                               p["transition"]["bias"])
    return out.reshape(N, H, W, C)


def init_cspdarknet53(key):
    ks = jax.random.split(key, 11)
    return dict(
        l1=[init_conv_block(ks[0], 3, 32, 3),
            init_conv_block(ks[1], 32, 64, 3, stride=2),
            init_csp_block(ks[2], 64, 1)],
        l2=[init_conv_block(ks[3], 64, 128, 3, stride=2),
            init_csp_block(ks[4], 128, 2)],
        l3=[init_conv_block(ks[5], 128, 256, 3, stride=2),
            init_csp_block(ks[6], 256, 8)],
        l4=[init_conv_block(ks[7], 256, 512, 3, stride=2),
            init_csp_block(ks[8], 512, 8)],
        l5=[init_conv_block(ks[9], 512, 1024, 3, stride=2),
            init_csp_block(ks[10], 1024, 4)],
    )


def _layer_apply(layer_params, x):
    for p in layer_params:
        if p["kind"] == "csp":
            x = csp_block_apply(p, x)
        else:
            x = conv_block_apply(p, x)
    return x


def cspdarknet53_forward(params, x_nchw):
    """Matches CSPDarknet53.forward: returns [c5, c4, c3] in NCHW (f32)."""
    x = jnp.transpose(x_nchw, (0, 2, 3, 1))      # NCHW -> NHWC
    c1 = _layer_apply(params["l1"], x)
    c2 = _layer_apply(params["l2"], c1)
    c3 = _layer_apply(params["l3"], c2)
    c4 = _layer_apply(params["l4"], c3)
    c5 = _layer_apply(params["l5"], c4)
    to_nchw = lambda t: jnp.transpose(t.astype(jnp.float32), (0, 3, 1, 2))
    return [to_nchw(c5), to_nchw(c4), to_nchw(c3)]


if __name__ == "__main__":
    key = jax.random.PRNGKey(0)
    k_param, k_input = jax.random.split(key)
    params = init_cspdarknet53(k_param)

    # small input consistent with the module: batch=2, 3 channels, 32x32 spatial
    x = jax.random.normal(k_input, (2, 3, 32, 32), jnp.float32)

    outs = cspdarknet53_forward(params, x)
    outs = [jax.block_until_ready(o) for o in outs]

    expected = [(2, 1024, 1, 1), (2, 512, 2, 2), (2, 256, 4, 4)]
    assert [o.shape for o in outs] == expected, [o.shape for o in outs]
    assert all(bool(jnp.all(jnp.isfinite(o))) for o in outs)
    print("KERNEL_OK")
</pallas_src>

<mosaic_0001>
module attributes {stable_mosaic.version = 11 : i64} {
  func.func @kernel(%arg0: i32, %arg1: i32, %arg2: memref<256x27xbf16, #tpu.memory_space<vmem>>, %arg3: memref<27x128xbf16, #tpu.memory_space<vmem>>, %arg4: memref<1x128xf32, #tpu.memory_space<vmem>>, %arg5: memref<256x128xbf16, #tpu.memory_space<vmem>>) attributes {dimension_semantics = [#tpu.dimension_semantics<parallel>, #tpu.dimension_semantics<parallel>], iteration_bounds = array<i64: 8, 1>, scalar_prefetch = 0 : i64, scratch_operands = 0 : i64, tpu.core_type = #tpu.core_type<tc>, window_params = [{transform_indices = @transform_0, window_bounds = array<i64: 256, 27>}, {transform_indices = @transform_1, window_bounds = array<i64: 27, 128>}, {transform_indices = @transform_2, window_bounds = array<i64: 1, 128>}, {transform_indices = @transform_3, window_bounds = array<i64: 256, 128>}]} {
    %c0 = arith.constant 0 : index
    %c0_0 = arith.constant 0 : index
    %0 = vector.load %arg2[%c0, %c0_0] : memref<256x27xbf16, #tpu.memory_space<vmem>>, vector<256x27xbf16>
    %c0_1 = arith.constant 0 : index
    %c0_2 = arith.constant 0 : index
    %1 = vector.load %arg3[%c0_1, %c0_2] : memref<27x128xbf16, #tpu.memory_space<vmem>>, vector<27x128xbf16>
    %cst = arith.constant dense<0.000000e+00> : vector<256x128xf32>
    %2 = tpu.matmul %0, %1, %cst {dimension_numbers = #tpu.dot_dimension_numbers<[1], [0], [0], [1], [0, 0, 1, 1], [], []>} : vector<256x27xbf16>, vector<27x128xbf16>, vector<256x128xf32> -> vector<256x128xf32>
    %c0_3 = arith.constant 0 : index
    %c0_4 = arith.constant 0 : index
    %3 = vector.load %arg4[%c0_3, %c0_4] : memref<1x128xf32, #tpu.memory_space<vmem>>, vector<1x128xf32>
    %4 = vector.broadcast %3 : vector<1x128xf32> to vector<256x128xf32>
    %5 = arith.addf %2, %4 : vector<256x128xf32>
    %cst_5 = arith.constant 2.000000e+01 : f32
    %6 = vector.broadcast %cst_5 : f32 to vector<256x128xf32>
    %7 = arith.minimumf %5, %6 : vector<256x128xf32>
    %8 = math.exp %7 : vector<256x128xf32>
    %cst_6 = arith.constant 1.000000e+00 : f32
    %9 = vector.broadcast %cst_6 : f32 to vector<256x128xf32>
    %10 = arith.addf %9, %8 : vector<256x128xf32>
    %11 = arith.mulf %10, %10 : vector<256x128xf32>
    %cst_7 = arith.constant 1.000000e+00 : f32
    %12 = vector.broadcast %cst_7 : f32 to vector<256x128xf32>
    %13 = arith.subf %11, %12 : vector<256x128xf32>
    %cst_8 = arith.constant 1.000000e+00 : f32
    %14 = vector.broadcast %cst_8 : f32 to vector<256x128xf32>
    %15 = arith.addf %11, %14 : vector<256x128xf32>
    %16 = tpu.reciprocal %15 {approx = true} : vector<256x128xf32> -> vector<256x128xf32>
    %17 = arith.mulf %13, %16 : vector<256x128xf32>
    %cst_9 = arith.constant 2.000000e+01 : f32
    %18 = vector.broadcast %cst_9 : f32 to vector<256x128xf32>
    %19 = arith.cmpf ogt, %5, %18 : vector<256x128xf32>
    %20 = arith.mulf %5, %17 : vector<256x128xf32>
    %21 = arith.select %19, %5, %20 : vector<256x128xi1>, vector<256x128xf32>
    %22 = arith.truncf %21 : vector<256x128xf32> to vector<256x128xbf16>
    %c0_10 = arith.constant 0 : index
    %c0_11 = arith.constant 0 : index
    %23 = vector.load %arg5[%c0_10, %c0_11] : memref<256x128xbf16, #tpu.memory_space<vmem>>, vector<256x128xbf16>
    tpu.vector_store %arg5[%c0_10, %c0_11], %22 {strides = array<i32>} : memref<256x128xbf16, #tpu.memory_space<vmem>>, vector<256x128xbf16>,
    return
  }
  func.func @transform_0(%arg0: i32, %arg1: i32) -> (i32, i32) {
    %c0_i32 = arith.constant 0 : i32
    %c0_i32_0 = arith.constant 0 : i32
    return %arg0, %c0_i32 : i32, i32
  }
  func.func @transform_1(%arg0: i32, %arg1: i32) -> (i32, i32) {
    %c0_i32 = arith.constant 0 : i32
    %c0_i32_0 = arith.constant 0 : i32
    return %c0_i32, %arg1 : i32, i32
  }
  func.func @transform_2(%arg0: i32, %arg1: i32) -> (i32, i32) {
    %c0_i32 = arith.constant 0 : i32
    %c0_i32_0 = arith.constant 0 : i32
    return %c0_i32, %arg1 : i32, i32
  }
  func.func @transform_3(%arg0: i32, %arg1: i32) -> (i32, i32) {
    %c0_i32 = arith.constant 0 : i32
    return %arg0, %arg1 : i32, i32
  }
}

</mosaic_0001>

<bundles_post_ra>
// kernel: tpu_custom_call.1
= control target key start
LH: loop header
LB: loop body
LE: loop exit
PB: predicated region body
PF: predicated region fallthrough
CT: control target
= control target key end

     0   :  { %8 = vsyncpa [#allocation3], 0  ;;  %s2365_s0 = inlined_call_operand.vmem [shape: bf16[2048,27], index: 0, kind: input, shape index: {}]   ;;  %s2366_s1 = inlined_call_operand.vmem [shape: bf16[27,128], index: 1, kind: input, shape index: {}]   ;;  %s2367_s2 = inlined_call_operand.vmem [shape: f32[1,128], index: 2, kind: input, shape index: {}]   ;;  %s2368_s3 = inlined_call_operand.hbm [shape: bf16[2048,128], index: 3, kind: output, shape index: {}]  }
   0x1   :  { %10 = vsyncpa [#allocation3 + $0x1], 0  ;;  %s1835_s12 = smov 0   ;;  %s1837_s13 = smov 0  }
   0x2   :  { %s1839_s14 = smov 0   ;;  %s1841_s15 = smov 0  }
   0x3   :  { %s1843_s16 = smov 0   ;;  %s1845_s17 = smov 0  }
   0x4 LB: > { %s1227_s18 = sadd.s32 4294967295, %s1809_s17   ;;  %s1228_s19 = sadd.s32 4294967294, %s1809_s17   ;;  %s1809_s17 = sphi %s1845_s17, %s16_s17   ;;  %s1805_s16 = sphi %s1843_s16, %s2375_s16   ;;  %s1801_s15 = sphi %s1841_s15, %s2374_s15   ;;  %s1797_s14 = sphi %s1839_s14, %s2373_s14   ;;  %s1793_s13 = sphi %s1837_s13, %s2372_s13   ;;  %s1789_s12 = sphi %s1835_s12, %s2371_s12  }
   0x5   : > { %s28_s20 = sadd.s32 1, %s1805_s16  ;;  %s115_s21 = sadd.s32 1, %s1797_s14 }
   0x6   : > { %p30_p0 = scmp.ge.s32.totalorder %s28_s20, 8  ;;  %p125_p1 = scmp.ne.s32.totalorder %s1797_s14, %s1793_s13 }
   0x7   : > { %p126_p2 = scmp.eq.s32.totalorder %s1227_s18, 7  ;;  %p131_p3 = scmp.ne.s32.totalorder %s1793_s13, %s1789_s12 }
   0x8   : > { %s2377_s20 = smov (%p30_p0, %s28_s20), 0  ;;  %p132_p5 = scmp.eq.s32.totalorder %s1228_s19, 7 }
   0x9   : > { %p1875_p4 = por %p126_p2, %p125_p1  ;;  %s110_s23 = ssub.s32 %s1805_s16, %s2377_s20 }
   0xa   : > { %p1233_p6 = scmp.ge.s32.totalorder %s1809_s17, 1  ;;  %p113_p7 = scmp.eq.s32.totalorder %s110_s23, 0 }
   0xb   : > { %p1882_p8 = por %p132_p5, %p131_p3  ;;  %p172_p9 = scmp.lt.s32.totalorder %s1809_s17, 9 }
   0xc   : > { %s1888_s25 = scalar_select %p113_p7, %s1797_s14, %s115_s21  }
   0xd   : > { %p173_p10 = pnand %p1233_p6, %p172_p9 }
   0xe   : > { %v1585_v0 = vld [vmem:[%s2366_s1] sm:$0xff] (!%p173_p10)   ;;  %vm401_vm0 = vcmask (!%p173_p10), 1044480   ;;  %v1586_v1 = vld [vmem:[%s2366_s1 + $0x8] sm:$0x3f] (!%p173_p10)   ;;  %vm402_vm1 = vcmask (!%p173_p10), 1045504   ;;  %s1235_s30 = sshll.u32 (!%p173_p10), %s1801_s15, 5 }
   0xf   : > { %176 = sbr.rel (%p173_p10) target bundleno = 380 (0x17c), region = 32  ;;  %1487 = vmatprep.subr.bf16.mxu0 (!%p173_p10), %v1585_v0  ;;  %1523 = vmatprep.subr.bf16.mxu1 (!%p173_p10), %v1585_v0  ;;  %v1811_v2 = vmov (!%p173_p10), 65535   ;;  %p204_p11 = scmp.lt.s32.totalorder (!%p173_p10), %s1235_s30, 255  ;;  %vm352_vm2 = vcmask (!%p173_p10), 220160   ;;  %v1937_v22 = vld [vmem:[%s2367_s2] ss:$0 sm:$0xff] (!%p173_p10) }
  0x10   : > { %1488 = vmatpush3.bf16.msra.mxu0 (!%p173_p10), %v1585_v0  ;;  %1525 = vmatpush3.bf16.msra.mxu1 (!%p173_p10), %v1585_v0  ;;  %v403_v3 = vsel (!%p173_p10), %vm401_vm0, 4294967295, %v1811_v2  ;;  %s200_s10 = sand.u32 (!%p173_p10), 1, %s1793_s13   ;;  %s1373_s19 = sshll.u32 (!%p173_p10), %s1801_s15, 11 }
  0x11   : > { %v404_v4 = vsel (!%p173_p10), %vm402_vm1, %v403_v3, 0  ;;  %s1234_s11 = sshll.u32 (!%p173_p10), %s200_s10, 7  ;;  %s2311_s26 = scalar_lea.hbm (!%p173_p10), %s2368_s3, %s1373_s19 }
  0x12   : > { %v406_v5 = vand.u32 (!%p173_p10), %v1586_v1, %v404_v4  ;;  %s2092_s18 = scalar_lea.vmem (!%p173_p10), [#allocation2], %s1234_s11  ;;  %s2319_s27 = scalar_lea.sflag (!%p173_p10), [#allocation3], %s200_s10 }
  0x13   : > { %s1128_s21 = sshll.u32 (!%p173_p10), %s2092_s18, 4  ;;  %s1812_s29 = smov (!%p173_p10), [#allocation2]   ;;  %s2313_s21 = int_to_ptr.vmem [resolvable:$true] %s1128_s21 }
  0x14   : > { %1489 = vmatprep.subr.bf16.mxu0 (!%p173_p10), %v406_v5  ;;  %1524 = vmatprep.subr.bf16.mxu1 (!%p173_p10), %v406_v5  ;;  %s1731_s28 = scalar_lea.vmem (!%p173_p10), %s2313_s21, 2048 }
  0x15   : > { %1490 = vmatpush3.bf16.msra.mxu0 (!%p173_p10), %v406_v5  ;;  %1526 = vmatpush3.bf16.msra.mxu1 (!%p173_p10), %v406_v5  ;;  %p1732_p12 = scmp.ne.s32.totalorder (!%p173_p10), %s2313_s21, %s1731_s28 }
  0x16   : > { %s2379_s30 = smov (!%p204_p11, %s1235_s30), 255 }
  0x17   : > { %s1236_s4 = sshll.u32 %s2379_s30, 2  ;;  %p1733_p13 = pnand %p1732_p12, %p1875_p4 }
  0x18   : > { %s1900_s7 = scalar_lea.vmem %s2365_s0, %s1236_s4  ;;  %s1735_s30 = sshll.u32 %s1812_s29, 4  ;;  %s1736_s30 = int_to_ptr.vmem [resolvable:$false] %s1735_s30 }
  0x19   : > { %v1587_v6 = vld [vmem:[%s1900_s7] sm:$0xff]   ;;  %v1589_v8 = vld [vmem:[%s1900_s7 + $0x8] sm:$0xff]   ;;  %v1591_v10 = vld [vmem:[%s1900_s7 + $0x10] sm:$0xff]   ;;  %p1734_p0 = pneg %p1733_p13  ;;  %s1737_s4 = scalar_lea.vmem %s1736_s30, 4096 }
  0x1a   : > { %v1588_v7 = vld [vmem:[%s1900_s7 + $0x40] sm:$0xff]   ;;  %1491 = vmatprep.mubr.msk.bf16.mxu0 %vm352_vm2, %v1587_v6  ;;  %v1590_v9 = vld [vmem:[%s1900_s7 + $0x48] sm:$0xff]   ;;  %v1592_v11 = vld [vmem:[%s1900_s7 + $0x50] sm:$0xff]   ;;  %p1738_p1 = scmp.lt.s32.totalorder %s2313_s21, %s1736_s30  ;;  %p1739_p2 = scmp.lt.s32.totalorder %s1737_s4, %s1731_s28 }
  0x1b   : > { %1507 = vmatprep.mubr.msk.bf16.mxu1 %vm352_vm2, %v1588_v7  ;;  %1492 = vmatmul.mubr.msk.bf16.vlgmr.msra.gmra.mrb[0].mxu0 %vm352_vm2, %v1589_v8  ;;  %v1593_v12 = vld [vmem:[%s1900_s7 + $0x18] sm:$0xff]   ;;  %v1595_v14 = vld [vmem:[%s1900_s7 + $0x20] sm:$0xff]   ;;  %v1597_v16 = vld [vmem:[%s1900_s7 + $0x28] sm:$0xff]  }
  0x1c   : > { %1508 = vmatmul.mubr.msk.bf16.vlgmr.msra.gmra.mrb[0].mxu1 %vm352_vm2, %v1590_v9  ;;  %1495 = vmatprep.mubr.msk.bf16.mxu0 %vm352_vm2, %v1591_v10  ;;  %v1594_v13 = vld [vmem:[%s1900_s7 + $0x58] sm:$0xff]   ;;  %v1596_v15 = vld [vmem:[%s1900_s7 + $0x60] sm:$0xff]   ;;  %v1598_v17 = vld [vmem:[%s1900_s7 + $0x68] sm:$0xff]   ;;  %p1740_p3 = por %p1739_p2, %p1738_p1 }
  0x1d   : > { %1511 = vmatprep.mubr.msk.bf16.mxu1 %vm352_vm2, %v1592_v11  ;;  %v1599_v18 = vld [vmem:[%s1900_s7 + $0x30] sm:$0xff]   ;;  %v1601_v20 = vld [vmem:[%s1900_s7 + $0x38] sm:$0xff]  }
  0x1e   : > { %v1600_v19 = vld [vmem:[%s1900_s7 + $0x70] sm:$0xff]   ;;  %v1602_v21 = vld [vmem:[%s1900_s7 + $0x78] sm:$0xff]   ;;  %p1741_p5 = pnand %p1740_p3, %p1734_p0 }
  0x23   : > { %1496 = vmatmul.mubr.msk.bf16.gmra.mrb[4].mxu0 %vm352_vm2, %v1593_v12 }
  0x24   : > { %1512 = vmatmul.mubr.msk.bf16.gmra.mrb[4].mxu1 %vm352_vm2, %v1594_v13  ;;  %1499 = vmatprep.mubr.msk.bf16.mxu0 %vm352_vm2, %v1595_v14 }
  0x25   : > { %1515 = vmatprep.mubr.msk.bf16.mxu1 %vm352_vm2, %v1596_v15 }
  0x2b   : > { %1500 = vmatmul.mubr.msk.bf16.gmra.mrb[8].mxu0 %vm352_vm2, %v1597_v16 }
  0x2c   : > { %1516 = vmatmul.mubr.msk.bf16.gmra.mrb[8].mxu1 %vm352_vm2, %v1598_v17  ;;  %1503 = vmatprep.mubr.msk.bf16.mxu0 %vm352_vm2, %v1599_v18 }
  0x2d   : > { %1519 = vmatprep.mubr.msk.bf16.mxu1 %vm352_vm2, %v1600_v19 }
  0x33   : > { %1504 = vmatmul.mubr.msk.bf16.gmra.mrb[12].mxu0 %vm352_vm2, %v1601_v20 }
  0x34   : > { %1520 = vmatmul.mubr.msk.bf16.gmra.mrb[12].mxu1 %vm352_vm2, %v1602_v21 }
  0xee   : > { %v1493_v23 = vpop.f32.mrb[0].mxu0 }
  0xef   : > { %v1940_v24 = vadd.f32 %v1493_v23, %v1937_v22  ;;  %v1509_v25 = vpop.f32.mrb[0].mxu1  ;;  %v442_v26 = vpop.f32.mrb[1].mxu0 }
  0xf0   : > { %v1943_v27 = vadd.f32 %v1509_v25, %v1937_v22  ;;  %v1946_v28 = vadd.f32 %v1937_v22, %v442_v26  ;;  %v506_v29 = vpop.f32.mrb[1].mxu1  ;;  %v1494_v30 = vpop.f32.mrb[2].mxu0 }
  0xf1   : > { %v571_v31 = vmin.f32 %v1940_v24, 20.0  ;;  %v1950_v32 = vadd.f32 %v1937_v22, %v506_v29  ;;  %v1953_v33 = vadd.f32 %v1494_v30, %v1937_v22  ;;  %v1510_v34 = vpop.f32.mrb[2].mxu1  ;;  %v445_v35 = vpop.f32.mrb[3].mxu0  ;;  %vm859_vm3 = vcmp.gt.f32.partialorder %v1940_v24, 20.0 }
  0xf2   : > { %v587_v36 = vmin.f32 %v1943_v27, 20.0  ;;  %v569_v37 = vmin.f32 %v1946_v28, 20.0  ;;  %v509_v38 = vpop.f32.mrb[3].mxu1  ;;  %v1960_v44 = vadd.f32 %v1510_v34, %v1937_v22  ;;  %v1963_v47 = vadd.f32 %v1937_v22, %v445_v35 }
  0xf3   : > { %v605_v39 = vmul.f32 1.442695, %v571_v31  ;;  %v585_v40 = vmin.f32 %v1950_v32, 20.0  ;;  %v572_v41 = vmin.f32 %v1953_v33, 20.0  ;;  %v1967_v49 = vadd.f32 %v1937_v22, %v509_v38 }
  0xf4   : > { %v637_v42 = vmul.f32 1.442695, %v587_v36  ;;  %v601_v43 = vmul.f32 1.442695, %v569_v37  ;;  %v588_v48 = vmin.f32 %v1960_v44, 20.0  ;;  %v570_v51 = vmin.f32 %v1963_v47, 20.0 }
  0xf5   : > { %1603 = vpow2.f32 %v605_v39  ;;  %v633_v45 = vmul.f32 1.442695, %v585_v40  ;;  %v607_v46 = vmul.f32 1.442695, %v572_v41  ;;  %v586_v56 = vmin.f32 %v1967_v49, 20.0 }
  0xf6   : > { %1605 = vpow2.f32 %v637_v42  ;;  %v1497_v50 = vpop.f32.mrb[4].mxu0  ;;  %v639_v55 = vmul.f32 1.442695, %v588_v48  ;;  %v603_v59 = vmul.f32 1.442695, %v570_v51  ;;  %vm875_vm4 = vcmp.gt.f32.partialorder %v1943_v27, 20.0 }
  0xf7   : > { %1607 = vpow2.f32 %v601_v43  ;;  %v1971_v52 = vadd.f32 %v1497_v50, %v1937_v22  ;;  %v1513_v53 = vpop.f32.mrb[4].mxu1  ;;  %v458_v54 = vpop.f32.mrb[5].mxu0  ;;  %v635_v63 = vmul.f32 1.442695, %v586_v56  ;;  %vm860_vm5 = vcmp.gt.f32.partialorder %v1953_v33, 20.0 }
  0xf8   : > { %1609 = vpow2.f32 %v633_v45  ;;  %v522_v57 = vpop.f32.mrb[5].mxu1  ;;  %v1498_v58 = vpop.f32.mrb[6].mxu0  ;;  %v1978_v0 = vadd.f32 %v1513_v53, %v1937_v22  ;;  %v1981_v1 = vadd.f32 %v1937_v22, %v458_v54  ;;  %vm876_vm6 = vcmp.gt.f32.partialorder %v1960_v44, 20.0 }
  0xf9   : > { %1611 = vpow2.f32 %v607_v46  ;;  %v575_v60 = vmin.f32 %v1971_v52, 20.0  ;;  %v1514_v61 = vpop.f32.mrb[6].mxu1  ;;  %v1975_v62 = vpop.f32.mrb[7].mxu0  ;;  %v1986_v4 = vadd.f32 %v1937_v22, %v522_v57  ;;  %v1989_v5 = vadd.f32 %v1498_v58, %v1937_v22 }
  0xfa   : > { %1613 = vpow2.f32 %v639_v55  ;;  %v1983_v2 = vpop.f32.mrb[7].mxu1  ;;  %v591_v6 = vmin.f32 %v1978_v0, 20.0  ;;  %v573_v7 = vmin.f32 %v1981_v1, 20.0  ;;  %v2012_v50 = vadd.f32 %v1514_v61, %v1937_v22 }
  0xfb   : > { %1615 = vpow2.f32 %v603_v59  ;;  %v613_v3 = vmul.f32 1.442695, %v575_v60  ;;  %v589_v8 = vmin.f32 %v1986_v4, 20.0  ;;  %v576_v11 = vmin.f32 %v1989_v5, 20.0 }
  0xfc   : > { %1617 = vpow2.f32 %v635_v63  ;;  %v645_v9 = vmul.f32 1.442695, %v591_v6  ;;  %v609_v10 = vmul.f32 1.442695, %v573_v7  ;;  %v2022_v61 = vadd.f32 %v1937_v22, %v1975_v62 }
  0xfd   : > { %1619 = vpow2.f32 %v613_v3  ;;  %v641_v13 = vmul.f32 1.442695, %v589_v8  ;;  %v615_v18 = vmul.f32 1.442695, %v576_v11  ;;  %vm857_vm7 = vcmp.gt.f32.partialorder %v1946_v28, 20.0 }
  0xfe   : > { %v1995_v14 = vpop.f32.mrb[8].mxu0  ;;  %1621 = vpow2.f32 %v645_v9  ;;  %vm873_vm8 = vcmp.gt.f32.partialorder %v1950_v32, 20.0  ;;  %vm858_vm9 = vcmp.gt.f32.partialorder %v1963_v47, 20.0  ;;  %vm874_vm10 = vcmp.gt.f32.partialorder %v1967_v49, 20.0 }
  0xff   : > { %v1604_v12 = vpop.eup %1603  ;;  %v1997_v15 = vpop.f32.mrb[8].mxu1  ;;  %1623 = vpow2.f32 %v609_v10  ;;  %v592_v10 = vmin.f32 %v2012_v50, 20.0  ;;  %vm863_vm11 = vcmp.gt.f32.partialorder %v1971_v52, 20.0  ;;  %vm864_vm12 = vcmp.gt.f32.partialorder %v1989_v5, 20.0 }
 0x100   : > { %v1606_v16 = vpop.eup %1605  ;;  %v667_v17 = vadd.f32 1.0, %v1604_v12  ;;  %v1999_v19 = vpop.f32.mrb[9].mxu0  ;;  %1625 = vpow2.f32 %v641_v13  ;;  %vm879_vm13 = vcmp.gt.f32.partialorder %v1978_v0, 20.0  ;;  %vm861_vm14 = vcmp.gt.f32.partialorder %v1981_v1, 20.0 }
 0x101   : > { %v2001_v20 = vpop.f32.mrb[9].mxu1  ;;  %v1608_v21 = vpop.eup %1607  ;;  %v683_v23 = vadd.f32 1.0, %v1606_v16  ;;  %1627 = vpow2.f32 %v615_v18  ;;  %vm880_vm15 = vcmp.gt.f32.partialorder %v2012_v50, 20.0  ;;  %vm862_vm0 = vcmp.gt.f32.partialorder %v2022_v61, 20.0 }
 0x102   : > { %v2003_v25 = vpop.f32.mrb[10].mxu0  ;;  %v2005_v26 = vpop.f32.mrb[10].mxu1  ;;  %v699_v30 = vmul.f32 %v667_v17, %v667_v17  ;;  %v665_v31 = vadd.f32 1.0, %v1608_v21  ;;  %vm877_vm1 = vcmp.gt.f32.partialorder %v1986_v4, 20.0 }
 0x103   : > { %v1610_v29 = vpop.eup %1609  ;;  %v2007_v34 = vpop.f32.mrb[11].mxu0  ;;  %v715_v37 = vmul.f32 %v683_v23, %v683_v23 }
 0x104   : > { %v2009_v35 = vpop.f32.mrb[11].mxu1  ;;  %v1612_v36 = vpop.eup %1611  ;;  %v681_v38 = vadd.f32 1.0, %v1610_v29  ;;  %v763_v40 = vadd.f32 1.0, %v699_v30  ;;  %v697_v41 = vmul.f32 %v665_v31, %v665_v31  ;;  %v2037_v29 = vadd.f32 %v1937_v22, %v1983_v2 }
 0x105   : > { %v1614_v39 = vpop.eup %1613  ;;  %v668_v42 = vadd.f32 1.0, %v1612_v36  ;;  %v779_v45 = vadd.f32 1.0, %v715_v37 }
 0x106   : > { %v1616_v43 = vpop.eup %1615  ;;  %v713_v46 = vmul.f32 %v681_v38, %v681_v38  ;;  %v684_v48 = vadd.f32 1.0, %v1614_v39  ;;  %1629 = vrcp.f32 %v763_v40  ;;  %v761_v53 = vadd.f32 1.0, %v697_v41  ;;  %v2014_v55 = vpop.f32.mrb[12].mxu0 }
 0x107   : > { %v1618_v51 = vpop.eup %1617  ;;  %v700_v54 = vmul.f32 %v668_v42, %v668_v42  ;;  %1631 = vrcp.f32 %v779_v45  ;;  %v2016_v59 = vpop.f32.mrb[12].mxu1  ;;  %v666_v3 = vadd.f32 1.0, %v1616_v43  ;;  %v574_v39 = vmin.f32 %v2022_v61, 20.0 }
 0x108   : > { %v1620_v56 = vpop.eup %1619  ;;  %v777_v57 = vadd.f32 1.0, %v713_v46  ;;  %v716_v58 = vmul.f32 %v684_v48, %v684_v48  ;;  %v2018_v60 = vpop.f32.mrb[13].mxu0  ;;  %1633 = vrcp.f32 %v761_v53  ;;  %v682_v9 = vadd.f32 1.0, %v1618_v51 }
 0x109   : > { %v764_v63 = vadd.f32 1.0, %v700_v54  ;;  %v2024_v6 = vpop.f32.mrb[13].mxu1  ;;  %v2026_v7 = vpop.f32.mrb[14].mxu0  ;;  %v698_v16 = vmul.f32 %v666_v3, %v666_v3  ;;  %v671_v17 = vadd.f32 1.0, %v1620_v56  ;;  %v2042_v40 = vadd.f32 %v1995_v14, %v1937_v22 }
 0x10a   : > { %1635 = vrcp.f32 %v777_v57  ;;  %v780_v8 = vadd.f32 1.0, %v716_v58  ;;  %v2029_v11 = vpop.f32.mrb[14].mxu1  ;;  %v2031_v12 = vpop.f32.mrb[15].mxu0  ;;  %v714_v21 = vmul.f32 %v682_v9, %v682_v9  ;;  %v647_v51 = vmul.f32 1.442695, %v592_v10 }
 0x10b   : > { %v1622_v13 = vpop.eup %1621  ;;  %1637 = vrcp.f32 %v764_v63  ;;  %v2033_v18 = vpop.f32.mrb[15].mxu1  ;;  %v762_v36 = vadd.f32 1.0, %v698_v16  ;;  %v703_v38 = vmul.f32 %v671_v17, %v671_v17  ;;  %v1274_v53 = vadd.f32 -1.0, %v699_v30 }
 0x10c   : > { %v1624_v62 = vpop.eup %1623  ;;  %1639 = vrcp.f32 %v780_v8  ;;  %v687_v23 = vadd.f32 1.0, %v1622_v13  ;;  %v778_v43 = vadd.f32 1.0, %v714_v21  ;;  %v1290_v57 = vadd.f32 -1.0, %v715_v37 }
 0x10d   : > { %v1626_v31 = vpop.eup %1625  ;;  %v669_v48 = vadd.f32 1.0, %v1624_v62  ;;  %1641 = vrcp.f32 %v762_v36  ;;  %v767_v2 = vadd.f32 1.0, %v703_v38  ;;  %v1272_v63 = vadd.f32 -1.0, %v697_v41 }
 0x10e   : > { %v1628_v42 = vpop.eup %1627  ;;  %v2045_v45 = vmul.f32 %v687_v23, %v687_v23  ;;  %v685_v56 = vadd.f32 1.0, %v1626_v31  ;;  %v1288_v3 = vadd.f32 -1.0, %v713_v46  ;;  %1643 = vrcp.f32 %v778_v43 }
 0x10f   : > { %v1275_v8 = vadd.f32 -1.0, %v700_v54  ;;  %1645 = vrcp.f32 %v767_v2  ;;  %v672_v13 = vadd.f32 1.0, %v1628_v42  ;;  %v1291_v17 = vadd.f32 -1.0, %v716_v58 }
 0x110   : > { %v1630_v14 = vpop.eup %1629  ;;  %v783_v9 = vadd.f32 1.0, %v2045_v45  ;;  %v2051_v37 = vmul.f32 %v669_v48, %v669_v48  ;;  %v611_v62 = vmul.f32 1.442695, %v574_v39  ;;  %v1273_v23 = vadd.f32 -1.0, %v698_v16 }
 0x111   : > { %v1632_v10 = vpop.eup %1631  ;;  %v827_v30 = vmul.f32 %v1630_v14, %v1274_v53  ;;  %v2053_v31 = vmul.f32 %v685_v56, %v685_v56  ;;  %v2055_v54 = vmul.f32 %v672_v13, %v672_v13  ;;  %v1289_v42 = vadd.f32 -1.0, %v714_v21 }
 0x112   : > { %v1634_v41 = vpop.eup %1633  ;;  %v843_v46 = vmul.f32 %v1632_v10, %v1290_v57  ;;  %v590_v58 = vmin.f32 %v2037_v29, 20.0  ;;  %1647 = vrcp.f32 %v783_v9  ;;  %v1278_v14 = vadd.f32 -1.0, %v703_v38 }
 0x113   : > { %v891_v43 = vmul.f32 %v827_v30, %v1940_v24  ;;  %v825_v2 = vmul.f32 %v1634_v41, %v1272_v63  ;;  %v768_v16 = vadd.f32 1.0, %v2055_v54  ;;  %v765_v63 = vadd.f32 1.0, %v2051_v37 }
 0x114   : > { %v1636_v36 = vpop.eup %1635  ;;  %v907_v48 = vmul.f32 %v843_v46, %v1943_v27  ;;  %1649 = vpow2.f32 %v647_v51  ;;  %vm878_vm2 = vcmp.gt.f32.partialorder %v2037_v29, 20.0 }
 0x115   : > { %v1638_v53 = vpop.eup %1637  ;;  %v841_v39 = vmul.f32 %v1636_v36, %v1288_v3  ;;  %v923_v21 = vsel %vm859_vm3, %v1940_v24, %v891_v43  ;;  %v781_v3 = vadd.f32 1.0, %v2053_v31  ;;  %1651 = vrcp.f32 %v768_v16 }
 0x116   : > { %v1640_v56 = vpop.eup %1639  ;;  %v828_v57 = vmul.f32 %v1638_v53, %v1275_v8  ;;  %v889_v9 = vmul.f32 %v825_v2, %v1946_v28  ;;  %1653 = vpow2.f32 %v611_v62  ;;  %v643_v8 = vmul.f32 1.442695, %v590_v58 }
 0x117   : > { %v844_v13 = vmul.f32 %v1640_v56, %v1291_v17  ;;  %v1642_v38 = vpop.eup %1641  ;;  %v939_v51 = vsel %vm875_vm4, %v1943_v27, %v907_v48  ;;  %v905_v30 = vmul.f32 %v841_v39, %v1950_v32  ;;  %v579_v17 = vmin.f32 %v2042_v40, 20.0 }
 0x118   : > { %v892_v10 = vmul.f32 %v828_v57, %v1953_v33  ;;  %v1644_v41 = vpop.eup %1643  ;;  %v826_v36 = vmul.f32 %v1642_v38, %v1273_v23  ;;  %1655 = vpow2.f32 %v643_v8  ;;  %v2084_v62 = vadd.f32 %v1997_v15, %v1937_v22 }
 0x119   : > { %v908_v24 = vmul.f32 %v844_v13, %v1960_v44  ;;  %v1646_v43 = vpop.eup %1645  ;;  %v842_v58 = vmul.f32 %v1644_v41, %v1289_v42  ;;  %v621_v53 = vmul.f32 1.442695, %v579_v17  ;;  %v937_v57 = vsel %vm873_vm8, %v1950_v32, %v905_v30 }
 0x11a   : > { %v924_v46 = vsel %vm860_vm5, %v1953_v33, %v892_v10  ;;  %v890_v39 = vmul.f32 %v826_v36, %v1963_v47  ;;  %v595_v33 = vmin.f32 %v2084_v62, 20.0  ;;  %v831_v23 = vmul.f32 %v1646_v43, %v1278_v14 }
 0x11b   : > { %v1382_v2 = vpack.c.bf16 %v924_v46, %v923_v21  ;;  %v940_v27 = vsel %vm876_vm6, %v1960_v44, %v908_v24  ;;  %v906_v15 = vmul.f32 %v842_v58, %v1967_v49  ;;  %1657 = vpow2.f32 %v621_v53 }
 0x11c   : > { %v1422_v48 = vpack.c.bf16 %v940_v27, %v939_v51  ;;  %v921_v44 = vsel %vm857_vm7, %v1946_v28, %v889_v9  ;;  %v922_v42 = vsel %vm858_vm9, %v1963_v47, %v890_v39  ;;  %1659 = vrcp.f32 %v765_v63  ;;  %v1648_v56 = vpop.eup %1647 }
 0x11d   : > { %1454 = vst [vmem:[%s2092_s18 + $0x8] sm:$0xff] %v1382_v2   ;;  %v653_v16 = vmul.f32 1.442695, %v595_v33  ;;  %v1377_v21 = vpack.c.bf16 %v922_v42, %v921_v44  ;;  %v938_v14 = vsel %vm874_vm10, %v1967_v49, %v906_v15  ;;  %1661 = vrcp.f32 %v781_v3 }
 0x11e   : > { %1462 = vst [vmem:[%s2092_s18 + $0x48] sm:$0xff] %v1422_v48   ;;  %v1650_v13 = vpop.eup %1649  ;;  %v1417_v10 = vpack.c.bf16 %v938_v14, %v937_v57  ;;  %v1279_v8 = vadd.f32 -1.0, %v2055_v54  ;;  %v895_v47 = vmul.f32 %v831_v23, %v1971_v52  ;;  %v2111_v9 = vadd.f32 %v1937_v22, %v1999_v19 }
 0x11f   : > { %1663 = vpow2.f32 %v653_v16  ;;  %v1652_v28 = vpop.eup %1651  ;;  %1378 = vst [vmem:[%s2092_s18] sm:$0xff] %v1377_v21   ;;  %v688_v63 = vadd.f32 1.0, %v1650_v13  ;;  %v2116_v49 = vadd.f32 %v1937_v22, %v2001_v20  ;;  %v2120_v54 = vadd.f32 %v2003_v25, %v1937_v22 }
 0x120   : > { %v1654_v38 = vpop.eup %1653  ;;  %1461 = vst [vmem:[%s2092_s18 + $0x40] sm:$0xff] %v1417_v10   ;;  %v832_v32 = vmul.f32 %v1652_v28, %v1279_v8  ;;  %v577_v30 = vmin.f32 %v2111_v9, 20.0  ;;  %v1294_v19 = vadd.f32 -1.0, %v2045_v45  ;;  %v927_v41 = vsel %vm863_vm11, %v1971_v52, %v895_v47 }
 0x121   : > { %v720_v3 = vmul.f32 %v688_v63, %v688_v63  ;;  %v670_v51 = vadd.f32 1.0, %v1654_v38  ;;  %v593_v20 = vmin.f32 %v2116_v49, 20.0  ;;  %v580_v58 = vmin.f32 %v2120_v54, 20.0 }
 0x122   : > { %v1656_v24 = vpop.eup %1655  ;;  %v896_v17 = vmul.f32 %v832_v32, %v1989_v5  ;;  %v617_v2 = vmul.f32 1.442695, %v577_v30  ;;  %v847_v45 = vmul.f32 %v1648_v56, %v1294_v19  ;;  %v2136_v42 = vadd.f32 %v2005_v26, %v1937_v22 }
 0x123   : > { %v784_v46 = vadd.f32 1.0, %v720_v3  ;;  %v702_v25 = vmul.f32 %v670_v51, %v670_v51  ;;  %v686_v36 = vadd.f32 1.0, %v1656_v24  ;;  %v649_v27 = vmul.f32 1.442695, %v593_v20 }
 0x124   : > { %v928_v43 = vsel %vm864_vm12, %v1989_v5, %v896_v17  ;;  %v623_v23 = vmul.f32 1.442695, %v580_v58  ;;  %v1276_v5 = vadd.f32 -1.0, %v2051_v37  ;;  %v2140_v16 = vadd.f32 %v1937_v22, %v2007_v34 }
 0x125   : > { %v1658_v53 = vpop.eup %1657  ;;  %v1392_v48 = vpack.c.bf16 %v928_v43, %v927_v41  ;;  %1665 = vrcp.f32 %v784_v46  ;;  %v766_v39 = vadd.f32 1.0, %v702_v25  ;;  %v718_v15 = vmul.f32 %v686_v36, %v686_v36 }
 0x126   : > { %v1660_v33 = vpop.eup %1659  ;;  %v675_v52 = vadd.f32 1.0, %v1658_v53  ;;  %1667 = vpow2.f32 %v617_v2  ;;  %v1292_v57 = vadd.f32 -1.0, %v2053_v31  ;;  %v596_v37 = vmin.f32 %v2136_v42, 20.0 }
 0x127   : > { %v1662_v44 = vpop.eup %1661  ;;  %1456 = vst [vmem:[%s2092_s18 + $0x18] sm:$0xff] %v1392_v48   ;;  %1669 = vrcp.f32 %v766_v39  ;;  %v782_v21 = vadd.f32 1.0, %v718_v15  ;;  %v829_v13 = vmul.f32 %v1660_v33, %v1276_v5  ;;  %v911_v8 = vmul.f32 %v847_v45, %v1978_v0 }
 0x128   : > { %v2143_v14 = vmul.f32 %v675_v52, %v675_v52  ;;  %1671 = vpow2.f32 %v649_v27  ;;  %v578_v26 = vmin.f32 %v2140_v16, 20.0  ;;  %v845_v34 = vmul.f32 %v1662_v44, %v1292_v57 }
 0x129   : > { %v1664_v56 = vpop.eup %1663  ;;  %1673 = vpow2.f32 %v623_v23  ;;  %v655_v28 = vmul.f32 1.442695, %v596_v37  ;;  %v2154_v47 = vadd.f32 %v1937_v22, %v2009_v35  ;;  %v2159_v32 = vadd.f32 %v2014_v55, %v1937_v22 }
 0x12a   : > { %v691_v10 = vadd.f32 1.0, %v1664_v56  ;;  %1675 = vrcp.f32 %v782_v21  ;;  %v771_v63 = vadd.f32 1.0, %v2143_v14  ;;  %v619_v38 = vmul.f32 1.442695, %v578_v26 }
 0x12b   : > { %v2163_v51 = vadd.f32 %v2016_v59, %v1937_v22  ;;  %v893_v30 = vmul.f32 %v829_v13, %v1981_v1  ;;  %1677 = vpow2.f32 %v655_v28  ;;  %v594_v24 = vmin.f32 %v2154_v47, 20.0 }
 0x12c   : > { %v2150_v31 = vmul.f32 %v691_v10, %v691_v10  ;;  %v1295_v35 = vadd.f32 -1.0, %v720_v3  ;;  %1679 = vpow2.f32 %v619_v38  ;;  %v583_v17 = vmin.f32 %v2159_v32, 20.0 }
 0x12d   : > { %v943_v55 = vsel %vm879_vm13, %v1978_v0, %v911_v8  ;;  %v909_v59 = vmul.f32 %v845_v34, %v1986_v4  ;;  %v651_v41 = vmul.f32 1.442695, %v594_v24  ;;  %v599_v46 = vmin.f32 %v2163_v51, 20.0 }
 0x12e   : > { %v787_v19 = vadd.f32 1.0, %v2150_v31  ;;  %v1277_v2 = vadd.f32 -1.0, %v702_v25  ;;  %1681 = vrcp.f32 %v771_v63  ;;  %v2177_v3 = vadd.f32 %v1937_v22, %v2018_v60 }
 0x12f   : > { %v1666_v20 = vpop.eup %1665  ;;  %v925_v58 = vsel %vm861_vm14, %v1981_v1, %v893_v30  ;;  %1683 = vpow2.f32 %v651_v41  ;;  %v629_v0 = vmul.f32 1.442695, %v583_v17  ;;  %v1293_v52 = vadd.f32 -1.0, %v718_v15 }
 0x130   : > { %v1668_v36 = vpop.eup %1667  ;;  %v848_v43 = vmul.f32 %v1666_v20, %v1295_v35  ;;  %1685 = vrcp.f32 %v787_v19  ;;  %v581_v25 = vmin.f32 %v2177_v3, 20.0  ;;  %v661_v44 = vmul.f32 1.442695, %v599_v46 }
 0x131   : > { %v1670_v27 = vpop.eup %1669  ;;  %v673_v53 = vadd.f32 1.0, %v1668_v36  ;;  %v2192_v21 = vadd.f32 %v1937_v22, %v2024_v6  ;;  %1687 = vpow2.f32 %v629_v0  ;;  %v941_v38 = vsel %vm877_vm1, %v1986_v4, %v909_v59 }
 0x132   : > { %v1672_v45 = vpop.eup %1671  ;;  %v912_v48 = vmul.f32 %v848_v43, %v2012_v50  ;;  %v830_v39 = vmul.f32 %v1670_v27, %v1277_v2  ;;  %v625_v15 = vmul.f32 1.442695, %v581_v25  ;;  %1689 = vpow2.f32 %v661_v44 }
 0x133   : > { %v1674_v33 = vpop.eup %1673  ;;  %v2184_v23 = vmul.f32 %v673_v53, %v673_v53  ;;  %v689_v60 = vadd.f32 1.0, %v1672_v45  ;;  %v597_v41 = vmin.f32 %v2192_v21, 20.0  ;;  %v2212_v36 = vadd.f32 %v2026_v7, %v1937_v22 }
 0x134   : > { %v1676_v5 = vpop.eup %1675  ;;  %v944_v1 = vsel %vm880_vm15, %v2012_v50, %v912_v48  ;;  %v894_v56 = vmul.f32 %v830_v39, %v2022_v61  ;;  %v676_v57 = vadd.f32 1.0, %v1674_v33  ;;  %1691 = vpow2.f32 %v625_v15 }
 0x135   : > { %v1432_v13 = vpack.c.bf16 %v944_v1, %v943_v55  ;;  %v846_v10 = vmul.f32 %v1676_v5, %v1293_v52  ;;  %v769_v8 = vadd.f32 1.0, %v2184_v23  ;;  %v2198_v26 = vmul.f32 %v689_v60, %v689_v60  ;;  %v1678_v34 = vpop.eup %1677 }
 0x136   : > { %v926_v37 = vsel %vm862_vm0, %v2022_v61, %v894_v56  ;;  %v708_v50 = vmul.f32 %v676_v57, %v676_v57  ;;  %v1680_v63 = vpop.eup %1679  ;;  %v692_v35 = vadd.f32 1.0, %v1678_v34  ;;  %v1282_v55 = vadd.f32 -1.0, %v2143_v14 }
 0x137   : > { %1464 = vst [vmem:[%s2092_s18 + $0x58] sm:$0xff] %v1432_v13   ;;  %v1387_v6 = vpack.c.bf16 %v926_v37, %v925_v58  ;;  %v910_v28 = vmul.f32 %v846_v10, %v2037_v29  ;;  %v785_v61 = vadd.f32 1.0, %v2198_v26  ;;  %v674_v19 = vadd.f32 1.0, %v1680_v63 }
 0x138   : > { %v772_v30 = vadd.f32 1.0, %v708_v50  ;;  %v1682_v17 = vpop.eup %1681  ;;  %1693 = vrcp.f32 %v769_v8  ;;  %v724_v59 = vmul.f32 %v692_v35, %v692_v35  ;;  %v657_v53 = vmul.f32 1.442695, %v597_v41 }
 0x139   : > { %1455 = vst [vmem:[%s2092_s18 + $0x10] sm:$0xff] %v1387_v6   ;;  %v942_v24 = vsel %vm878_vm2, %v2037_v29, %v910_v28  ;;  %v1684_v4 = vpop.eup %1683  ;;  %v706_v46 = vmul.f32 %v674_v19, %v674_v19  ;;  %v1298_v29 = vadd.f32 -1.0, %v2150_v31  ;;  %v835_v27 = vmul.f32 %v1682_v17, %v1282_v55 }
 0x13a   : > { %v1427_v20 = vpack.c.bf16 %v942_v24, %v941_v38  ;;  %1695 = vrcp.f32 %v772_v30  ;;  %v1686_v43 = vpop.eup %1685  ;;  %v690_v2 = vadd.f32 1.0, %v1684_v4  ;;  %v788_v58 = vadd.f32 1.0, %v724_v59 }
 0x13b   : > { %1697 = vrcp.f32 %v785_v61  ;;  %v770_v14 = vadd.f32 1.0, %v706_v46  ;;  %v1688_v45 = vpop.eup %1687  ;;  %v851_v48 = vmul.f32 %v1686_v43, %v1298_v29  ;;  %v584_v39 = vmin.f32 %v2212_v36, 20.0 }
 0x13c   : > { %1463 = vst [vmem:[%s2092_s18 + $0x50] sm:$0xff] %v1427_v20   ;;  %v722_v0 = vmul.f32 %v690_v2, %v690_v2  ;;  %1699 = vrcp.f32 %v788_v58  ;;  %v2219_v7 = vadd.f32 %v2029_v11, %v1937_v22  ;;  %v1690_v33 = vpop.eup %1689  ;;  %v899_v31 = vmul.f32 %v835_v27, %v2042_v40 }
 0x13d   : > { %1701 = vrcp.f32 %v770_v14  ;;  %v631_v52 = vmul.f32 1.442695, %v584_v39  ;;  %v679_v60 = vadd.f32 1.0, %v1688_v45  ;;  %vm867_vm3 = vcmp.gt.f32.partialorder %v2042_v40, 20.0 }
 0x13e   : > { %v786_v25 = vadd.f32 1.0, %v722_v0  ;;  %1703 = vpow2.f32 %v657_v53  ;;  %v1692_v44 = vpop.eup %1691  ;;  %vm883_vm4 = vcmp.gt.f32.partialorder %v2084_v62, 20.0  ;;  %v915_v5 = vmul.f32 %v851_v48, %v2084_v62 }
 0x13f   : > { %v1283_v56 = vadd.f32 -1.0, %v708_v50  ;;  %vm868_vm5 = vcmp.gt.f32.partialorder %v2120_v54, 20.0  ;;  %v695_v11 = vadd.f32 1.0, %v1690_v33  ;;  %v600_v57 = vmin.f32 %v2219_v7, 20.0 }
 0x140   : > { %1705 = vrcp.f32 %v786_v25  ;;  %v931_v10 = vsel %vm867_vm3, %v2042_v40, %v899_v31  ;;  %v1280_v15 = vadd.f32 -1.0, %v2184_v23  ;;  %v1296_v37 = vadd.f32 -1.0, %v2198_v26 }
 0x141   : > { %1707 = vpow2.f32 %v631_v52  ;;  %v1299_v8 = vadd.f32 -1.0, %v724_v59  ;;  %vm884_vm6 = vcmp.gt.f32.partialorder %v2136_v42, 20.0  ;;  %vm865_vm7 = vcmp.gt.f32.partialorder %v2111_v9, 20.0 }
 0x142   : > { %v1694_v1 = vpop.eup %1693  ;;  %vm866_vm8 = vcmp.gt.f32.partialorder %v2140_v16, 20.0  ;;  %v2233_v50 = vmul.f32 %v679_v60, %v679_v60  ;;  %v663_v28 = vmul.f32 1.442695, %v600_v57  ;;  %v2237_v63 = vadd.f32 %v1937_v22, %v2031_v12 }
 0x143   : > { %v947_v40 = vsel %vm883_vm4, %v2084_v62, %v915_v5  ;;  %v833_v23 = vmul.f32 %v1694_v1, %v1280_v15  ;;  %v1281_v26 = vadd.f32 -1.0, %v706_v46  ;;  %v2244_v38 = vadd.f32 %v1937_v22, %v2033_v18 }
 0x144   : > { %v1696_v13 = vpop.eup %1695  ;;  %v2247_v30 = vmul.f32 %v695_v11, %v695_v11  ;;  %1709 = vpow2.f32 %v663_v28  ;;  %v582_v24 = vmin.f32 %v2237_v63, 20.0  ;;  %v1297_v19 = vadd.f32 -1.0, %v722_v0 }
 0x145   : > { %v1698_v34 = vpop.eup %1697  ;;  %v836_v6 = vmul.f32 %v1696_v13, %v1283_v56  ;;  %v677_v17 = vadd.f32 1.0, %v1692_v44  ;;  %v598_v20 = vmin.f32 %v2244_v38, 20.0  ;;  %v775_v18 = vadd.f32 1.0, %v2233_v50 }
 0x146   : > { %v1700_v35 = vpop.eup %1699  ;;  %v849_v12 = vmul.f32 %v1698_v34, %v1296_v37  ;;  %v627_v41 = vmul.f32 1.442695, %v582_v24  ;;  %v897_v59 = vmul.f32 %v833_v23, %v2111_v9  ;;  %v791_v58 = vadd.f32 1.0, %v2247_v30 }
 0x147   : > { %v900_v61 = vmul.f32 %v836_v6, %v2120_v54  ;;  %v1702_v62 = vpop.eup %1701  ;;  %v852_v22 = vmul.f32 %v1700_v35, %v1299_v8  ;;  %v659_v29 = vmul.f32 1.442695, %v598_v20  ;;  %v709_v39 = vmul.f32 %v677_v17, %v677_v17 }
 0x148   : > { %v1704_v4 = vpop.eup %1703  ;;  %v834_v43 = vmul.f32 %v1702_v62, %v1281_v26  ;;  %1711 = vpow2.f32 %v627_v41  ;;  %v929_v33 = vsel %vm865_vm7, %v2111_v9, %v897_v59  ;;  %vm881_vm9 = vcmp.gt.f32.partialorder %v2116_v49, 20.0 }
 0x149   : > { %v932_v55 = vsel %vm868_vm5, %v2120_v54, %v900_v61  ;;  %v916_v27 = vmul.f32 %v852_v22, %v2136_v42  ;;  %v693_v14 = vadd.f32 1.0, %v1704_v4  ;;  %v913_v54 = vmul.f32 %v849_v12, %v2116_v49 }
 0x14a   : > { %v1402_v46 = vpack.c.bf16 %v932_v55, %v931_v10  ;;  %v1706_v2 = vpop.eup %1705  ;;  %v898_v0 = vmul.f32 %v834_v43, %v2140_v16  ;;  %1713 = vpow2.f32 %v659_v29  ;;  %vm882_vm10 = vcmp.gt.f32.partialorder %v2154_v47, 20.0 }
 0x14b   : > { %v1708_v53 = vpop.eup %1707  ;;  %v850_v45 = vmul.f32 %v1706_v2, %v1297_v19  ;;  %v948_v48 = vsel %vm884_vm6, %v2136_v42, %v916_v27  ;;  %1715 = vrcp.f32 %v775_v18  ;;  %v725_v42 = vmul.f32 %v693_v14, %v693_v14 }
 0x14c   : > { %1458 = vst [vmem:[%s2092_s18 + $0x28] sm:$0xff] %v1402_v46   ;;  %v680_v25 = vadd.f32 1.0, %v1708_v53  ;;  %v1442_v31 = vpack.c.bf16 %v948_v48, %v947_v40  ;;  %v930_v52 = vsel %vm866_vm8, %v2140_v16, %v898_v0  ;;  %v945_v5 = vsel %vm881_vm9, %v2116_v49, %v913_v54 }
 0x14d   : > { %v914_v60 = vmul.f32 %v850_v45, %v2154_v47  ;;  %v1397_v44 = vpack.c.bf16 %v930_v52, %v929_v33  ;;  %1717 = vrcp.f32 %v791_v58  ;;  %v773_v16 = vadd.f32 1.0, %v709_v39 }
 0x14e   : > { %1466 = vst [vmem:[%s2092_s18 + $0x68] sm:$0xff] %v1442_v31   ;;  %v712_v9 = vmul.f32 %v680_v25, %v680_v25  ;;  %v1710_v56 = vpop.eup %1709  ;;  %v789_v10 = vadd.f32 1.0, %v725_v42  ;;  %v1286_v40 = vadd.f32 -1.0, %v2233_v50  ;;  %v1302_v12 = vadd.f32 -1.0, %v2247_v30 }
 0x14f   : > { %v946_v1 = vsel %vm882_vm10, %v2154_v47, %v914_v60  ;;  %1457 = vst [vmem:[%s2092_s18 + $0x20] sm:$0xff] %v1397_v44   ;;  %v696_v13 = vadd.f32 1.0, %v1710_v56  ;;  %v1284_v41 = vadd.f32 -1.0, %v709_v39  ;;  %vm871_vm11 = vcmp.gt.f32.partialorder %v2159_v32, 20.0 }
 0x150   : > { %v1437_v11 = vpack.c.bf16 %v946_v1, %v945_v5  ;;  %v776_v57 = vadd.f32 1.0, %v712_v9  ;;  %v1287_v19 = vadd.f32 -1.0, %v712_v9  ;;  %v1300_v46 = vadd.f32 -1.0, %v725_v42 }
 0x151   : > { %v728_v15 = vmul.f32 %v696_v13, %v696_v13  ;;  %vm872_vm12 = vcmp.gt.f32.partialorder %v2212_v36, 20.0  ;;  %vm887_vm13 = vcmp.gt.f32.partialorder %v2163_v51, 20.0  ;;  %vm888_vm14 = vcmp.gt.f32.partialorder %v2219_v7, 20.0 }
 0x152   : > { %1465 = vst [vmem:[%s2092_s18 + $0x60] sm:$0xff] %v1437_v11   ;;  %1719 = vrcp.f32 %v776_v57  ;;  %v1712_v37 = vpop.eup %1711  ;;  %vm869_vm15 = vcmp.gt.f32.partialorder %v2177_v3, 20.0  ;;  %vm870_vm0 = vcmp.gt.f32.partialorder %v2237_v63, 20.0  ;;  %vm885_vm1 = vcmp.gt.f32.partialorder %v2192_v21, 20.0 }
 0x153   : > { %1721 = vrcp.f32 %v773_v16  ;;  %v792_v34 = vadd.f32 1.0, %v728_v15  ;;  %v678_v49 = vadd.f32 1.0, %v1712_v37  ;;  %v1303_v4 = vadd.f32 -1.0, %v728_v15 }
 0x154   : > { %v1714_v8 = vpop.eup %1713  ;;  %1723 = vrcp.f32 %v789_v10  ;;  %vm886_vm2 = vcmp.gt.f32.partialorder %v2244_v38, 20.0 }
 0x155   : > { %v1716_v6 = vpop.eup %1715  ;;  %v694_v47 = vadd.f32 1.0, %v1714_v8  ;;  %1725 = vrcp.f32 %v792_v34  ;;  %v710_v28 = vmul.f32 %v678_v49, %v678_v49 }
 0x156   : > { %v839_v24 = vmul.f32 %v1716_v6, %v1286_v40 }
 0x157   : > { %v726_v23 = vmul.f32 %v694_v47, %v694_v47  ;;  %v774_v26 = vadd.f32 1.0, %v710_v28  ;;  %v1718_v61 = vpop.eup %1717  ;;  %v1285_v54 = vadd.f32 -1.0, %v710_v28 }
 0x158   : > { %v855_v20 = vmul.f32 %v1718_v61, %v1302_v12  ;;  %v903_v62 = vmul.f32 %v839_v24, %v2159_v32 }
 0x159   : > { %v790_v35 = vadd.f32 1.0, %v726_v23  ;;  %1727 = vrcp.f32 %v774_v26  ;;  %v1301_v45 = vadd.f32 -1.0, %v726_v23 }
 0x15a   : > { %v919_v30 = vmul.f32 %v855_v20, %v2163_v51  ;;  %v935_v43 = vsel %vm871_vm11, %v2159_v32, %v903_v62 }
 0x15b   : > { %1729 = vrcp.f32 %v790_v35 }
 0x15c   : > { %v1720_v17 = vpop.eup %1719  ;;  %v951_v48 = vsel %vm887_vm13, %v2163_v51, %v919_v30 }
 0x15d   : > { %v840_v55 = vmul.f32 %v1720_v17, %v1287_v19  ;;  %v1722_v22 = vpop.eup %1721 }
 0x15e   : > { %v1724_v18 = vpop.eup %1723  ;;  %v837_v29 = vmul.f32 %v1722_v22, %v1284_v41 }
 0x15f   : > { %v904_v50 = vmul.f32 %v840_v55, %v2212_v36  ;;  %v1726_v59 = vpop.eup %1725  ;;  %v853_v58 = vmul.f32 %v1724_v18, %v1300_v46 }
 0x160   : > { %v856_v27 = vmul.f32 %v1726_v59, %v1303_v4 }
 0x161   : > { %v936_v2 = vsel %vm872_vm12, %v2212_v36, %v904_v50  ;;  %v901_v36 = vmul.f32 %v837_v29, %v2177_v3  ;;  %v917_v33 = vmul.f32 %v853_v58, %v2192_v21 }
 0x162   : > { %v1412_v14 = vpack.c.bf16 %v936_v2, %v935_v43  ;;  %v920_v53 = vmul.f32 %v856_v27, %v2219_v7 }
 0x163   : > { %v1728_v0 = vpop.eup %1727  ;;  %v949_v42 = vsel %vm885_vm1, %v2192_v21, %v917_v33 }
 0x164   : > { %1460 = vst [vmem:[%s2092_s18 + $0x38] sm:$0xff] %v1412_v14   ;;  %v952_v39 = vsel %vm888_vm14, %v2219_v7, %v920_v53  ;;  %v838_v25 = vmul.f32 %v1728_v0, %v1285_v54  ;;  %v933_v7 = vsel %vm869_vm15, %v2177_v3, %v901_v36 }
 0x165   : > { %v1730_v32 = vpop.eup %1729  ;;  %v1452_v31 = vpack.c.bf16 %v952_v39, %v951_v48 }
 0x166   : > { %v854_v52 = vmul.f32 %v1730_v32, %v1301_v45  ;;  %v902_v60 = vmul.f32 %v838_v25, %v2237_v63 }
 0x167   : > { %1468 = vst [vmem:[%s2092_s18 + $0x78] sm:$0xff] %v1452_v31  }
 0x168   : > { %v918_v51 = vmul.f32 %v854_v52, %v2244_v38  ;;  %v934_v44 = vsel %vm870_vm0, %v2237_v63, %v902_v60 }
 0x169   : > { %v1407_v5 = vpack.c.bf16 %v934_v44, %v933_v7 }
 0x16a   : > { %v950_v1 = vsel %vm886_vm2, %v2244_v38, %v918_v51 }
 0x16b   : > { %v1447_v3 = vpack.c.bf16 %v950_v1, %v949_v42  ;;  %1459 = vst [vmem:[%s2092_s18 + $0x30] sm:$0xff] %v1407_v5  }
 0x16d   : > { %1467 = vst [vmem:[%s2092_s18 + $0x70] sm:$0xff] %v1447_v3  }
 0x16e   : > { %1744 = shalt.err (!%p1741_p5)
}
 0x16f   : > { %s1745_s5 = scalar_lea.hbm %s2311_s26, 2048  ;;  %s1749_s8 = scalar_lea.hbm %s2368_s3, 16384 }
 0x170   : > { %p1746_p6 = scmp.ne.s32.totalorder %s2311_s26, %s1745_s5  ;;  %p1750_p10 = scmp.lt.u32.totalorder %s2311_s26, %s2368_s3 }
 0x171   : > { %p1751_p11 = scmp.lt.u32.totalorder %s1749_s8, %s1745_s5  ;;  %p1753_p13 = scmp.lt.u32.totalorder %s1745_s5, %s2311_s26 }
 0x172   : > { %p1747_p7 = pnand %p1746_p6, %p1875_p4 }
 0x173   : > { %p1752_p12 = por %p1751_p11, %p1750_p10 }
 0x174   : > { %p1748_p9 = pneg %p1747_p7 }
 0x175   : > { %p1754_p0 = por %p1753_p13, %p1752_p12 }
 0x177   : > { %p1755_p1 = pnand %p1754_p0, %p1748_p9 }
 0x179   : > { %1758 = shalt.err (!%p1755_p1)
}
 0x17a   : > { %s1813_s11 = smov 64   ;;  %s1814_s18 = smov 4  }
 0x17b   : > { %1527 = dma.vmem_to_hbm [thread:$0]  (%p1875_p4), %s2313_s21, 2048, %s2311_s26, %s2319_s27, %s1813_s11, %s1813_s11, %s1814_s18  }
 0x17c PF: > { %p1533_p2 = scmp.ge.s32.totalorder %s1809_s17, 2  ;;  %s1143_s19 = sand.u32 1, %s1789_s12  }
 0x17d   : > { %s1144_s15 = scalar_lea.sflag [#allocation3], %s1143_s19 }
 0x17e   : > { %p1530_p3 = pnand %p1533_p2, %p1882_p8 }
 0x180   : > { %1784 = dma.done.wait (!%p1530_p3), %s1144_s15, 2048  }
 0x181   : > { %1786 = vsyncadd (!%p1530_p3), %s1144_s15, 4294965248  ;;  %s16_s17 = sadd.s32 1, %s1809_s17   ;;  %s2371_s12 = smov %s1793_s13 }
 0x182   : > { %p13_p5 = scmp.ge.s32.totalorder %s16_s17, 10   ;;  %s2372_s13 = smov %s1797_s14 }
 0x183   : > { %s2373_s14 = smov %s1888_s25  ;;  %s2374_s15 = smov %s1805_s16 }
 0x184   : > { %s2375_s16 = smov %s2377_s20  ;;  %15 = sbr.rel (!%p13_p5) target bundleno = 4 (0x4), region = 73 }
 0x18b   :  { %1149 = vsyncpa [#allocation3], 1 }
 0x18c   :  { %1151 = vsyncpa [#allocation3 + $0x1], 1 }

</bundles_post_ra>
